<compile_context>
chip_gen: v6e
topology: v6e:2x2x1
jax: 0.10.0
libtpu: 0.0.40
codegen_flags: <defaults>
</compile_context>

<pallas_src>
import functools
import math

import jax
import jax.numpy as jnp
from jax import lax
from jax.experimental import pallas as pl
from jax.experimental.pallas import tpu as pltpu


# MXU-native operand dtype (v5e/v6e/v7x all run bf16 at full MXU rate).
# Accumulation is always f32 via preferred_element_type + f32 VMEM scratch.
COMPUTE_DTYPE = jnp.bfloat16

# GPT-2 causal mask value (masked_bias), NOT -inf.
MASK_VALUE = -10000.0

# Explicit scoped-VMEM ceiling, sized against v7x's 64 MiB physical VMEM.
VMEM_LIMIT_BYTES = 32 * 1024 * 1024


def _fit_tile(dim, preferred):
    """Largest tile <= preferred that divides dim (falls back to full dim)."""
    t = min(preferred, dim)
    while t > 8 and dim % t != 0:
        t //= 2
    if dim % t != 0:
        t = dim
    return t


def _tpu_kv_tile_default():
    """kv tile: 256 fills the 256-wide MXU on v6e/v7x; 128 on v5e / unknown."""
    try:
        kind = jax.devices()[0].device_kind.lower()
    except Exception:
        return 128
    if "v6" in kind or "v7" in kind:
        return 256
    return 128


# ------------------------------ linear (Conv1D) ------------------------------


def _linear_kernel(x_ref, w_ref, b_ref, o_ref, acc_ref):
    kk = pl.program_id(2)

    @pl.when(kk == 0)
    def _init():
        # Fold the bias into the accumulator init (saves a finalize add).
        acc_ref[...] = jnp.zeros_like(acc_ref) + b_ref[...].astype(jnp.float32)

    acc_ref[...] += jnp.dot(
        x_ref[...].astype(COMPUTE_DTYPE),
        w_ref[...].astype(COMPUTE_DTYPE),
        preferred_element_type=jnp.float32,
    )

    @pl.when(kk == pl.num_programs(2) - 1)
    def _finalize():
        o_ref[...] = acc_ref[...].astype(o_ref.dtype)


def linear_pallas(x, w, b, *, out_dtype=None, tm=512, tn=256, tk=256):
    """HF Conv1D semantics: out = x @ w + b.  x: (B, T, K) -> (B, T, N).

    (B, T) is flattened into a single M axis so larger M tiles cut the number
    of times the (K, N) weight stream is re-read from HBM.
    """
    B, T, K = x.shape
    N = w.shape[1]
    M = B * T
    x2 = x.reshape(M, K)
    tm = _fit_tile(M, tm)
    tn = _fit_tile(N, tn)
    tk = _fit_tile(K, tk)
    out_dtype = out_dtype if out_dtype is not None else x.dtype

    grid = (M // tm, N // tn, K // tk)
    out = pl.pallas_call(
        _linear_kernel,
        out_shape=jax.ShapeDtypeStruct((M, N), out_dtype),
        grid=grid,
        in_specs=[
            pl.BlockSpec((tm, tk), lambda mi, ni, kk: (mi, kk)),
            pl.BlockSpec((tk, tn), lambda mi, ni, kk: (kk, ni)),
            pl.BlockSpec((1, tn), lambda mi, ni, kk: (0, ni)),
        ],
        out_specs=pl.BlockSpec((tm, tn), lambda mi, ni, kk: (mi, ni)),
        scratch_shapes=[pltpu.VMEM((tm, tn), jnp.float32)],
        compiler_params=pltpu.CompilerParams(
            dimension_semantics=("parallel", "parallel", "arbitrary"),
            vmem_limit_bytes=VMEM_LIMIT_BYTES,
        ),
    )(x2, w, b.reshape(1, N).astype(jnp.float32))
    return out.reshape(B, T, N)


# --------------------------- flash causal attention ---------------------------


def _flash_attn_kernel(qi_tab, ki_tab, last_tab,
                       q_ref, k_ref, v_ref, o_ref,
                       m_sc, l_sc, acc_sc, q_sc,
                       *, heads_per_block, head_dim, tq, tk, scale):
    s_idx = pl.program_id(2)
    qi = qi_tab[s_idx]
    ki = ki_tab[s_idx]
    is_first = ki == 0
    is_last = last_tab[s_idx] == 1

    @pl.when(is_first)
    def _init():
        m_sc[...] = jnp.full_like(m_sc, -jnp.inf)
        l_sc[...] = jnp.zeros_like(l_sc)
        acc_sc[...] = jnp.zeros_like(acc_sc)
        # Fold 1/sqrt(D) into Q once per q tile (not once per kv step).
        q_sc[...] = (q_ref[0].astype(jnp.float32) * jnp.float32(scale)).astype(
            COMPUTE_DTYPE)

    q = q_sc[...]                              # (tq, P*D) bf16, pre-scaled
    k = k_ref[0].astype(COMPUTE_DTYPE)         # (tk, P*D)
    v = v_ref[0].astype(COMPUTE_DTYPE)         # (tk, P*D)

    # Causal mask on global positions (GPT-2 masked_bias = -10000, not -inf).
    # Fully visible blocks fold to an all-True predicate at negligible VPU cost.
    row = qi * tq + lax.broadcasted_iota(jnp.int32, (tq, tk), 0)
    col = ki * tk + lax.broadcasted_iota(jnp.int32, (tq, tk), 1)
    keep = col <= row

    D = head_dim
    for h in range(heads_per_block):           # static loop over packed heads
        q_h = q[:, h * D:(h + 1) * D]
        k_h = k[:, h * D:(h + 1) * D]
        v_h = v[:, h * D:(h + 1) * D]

        # QK^T: contract last axes directly — no explicit K transpose.
        s = lax.dot_general(q_h, k_h, (((1,), (1,)), ((), ())),
                            preferred_element_type=jnp.float32)
        s = jnp.where(keep, s, jnp.float32(MASK_VALUE))

        # Online softmax update (elementwise math stays f32).
        m_prev = m_sc[h]
        m_new = jnp.maximum(m_prev, jnp.max(s, axis=-1, keepdims=True))
        alpha = jnp.exp(m_prev - m_new)
        p = jnp.exp(s - m_new)
        l_sc[h] = alpha * l_sc[h] + jnp.sum(p, axis=-1, keepdims=True)
        acc_sc[h] = alpha * acc_sc[h] + jnp.dot(
            p.astype(COMPUTE_DTYPE), v_h, preferred_element_type=jnp.float32)
        m_sc[h] = m_new

    @pl.when(is_last)
    def _finalize():
        outs = []
        for h in range(heads_per_block):
            inv_l = pl.reciprocal(l_sc[h], approx=False)   # exact: (tq,1) / q tile
            outs.append((acc_sc[h] * inv_l).astype(o_ref.dtype))
        # Single lane-dense store of all packed heads.
        o_ref[0] = jnp.concatenate(outs, axis=-1)


def flash_attention_pallas(qkv, num_heads, *, tq=128, tk=None):
    """Causal self-attention straight from the packed c_attn output.

    qkv: (B, T, 3E) with [Q | K | V] along the last axis (bf16 recommended).
    Returns (B, T, E) in merged-head layout, so no head transposes touch HBM.
    """
    B, T, three_e = qkv.shape
    E = three_e // 3
    H = num_heads
    D = E // H
    assert H * D == E and 3 * E == three_e

    if tk is None:
        tk = _tpu_kv_tile_default()
    tq = _fit_tile(T, tq)
    tk = _fit_tile(T, tk)

    # Pack P heads per grid step so each Q/K/V/O block is >= 128 lanes wide
    # (lane-dense DMAs + unmasked stores for GPT-2's D=64 heads).
    P = max(1, 128 // D)
    while P > 1 and H % P != 0:
        P //= 2
    HPb = H // P          # number of packed head-blocks along the E axis
    BW = P * D            # lane width of each block

    # Flattened lower-triangular (qi, ki) step table: no empty causal steps.
    nq = T // tq
    qi_l, ki_l, last_l = [], [], []
    for qi in range(nq):
        last_ki = ((qi + 1) * tq - 1) // tk
        for ki in range(last_ki + 1):
            qi_l.append(qi)
            ki_l.append(ki)
            last_l.append(1 if ki == last_ki else 0)
    qi_tab = jnp.asarray(qi_l, dtype=jnp.int32)
    ki_tab = jnp.asarray(ki_l, dtype=jnp.int32)
    last_tab = jnp.asarray(last_l, dtype=jnp.int32)
    nsteps = len(qi_l)

    def q_map(b, hp, s, qi_t, ki_t, la_t):
        return (b, qi_t[s], hp)

    def k_map(b, hp, s, qi_t, ki_t, la_t):
        return (b, ki_t[s], hp + HPb)

    def v_map(b, hp, s, qi_t, ki_t, la_t):
        return (b, ki_t[s], hp + 2 * HPb)

    def o_map(b, hp, s, qi_t, ki_t, la_t):
        return (b, qi_t[s], hp)

    kernel = functools.partial(
        _flash_attn_kernel,
        heads_per_block=P, head_dim=D, tq=tq, tk=tk, scale=1.0 / math.sqrt(D))

    grid_spec = pltpu.PrefetchScalarGridSpec(
        num_scalar_prefetch=3,
        grid=(B, HPb, nsteps),
        in_specs=[
            pl.BlockSpec((1, tq, BW), q_map),
            pl.BlockSpec((1, tk, BW), k_map),
            pl.BlockSpec((1, tk, BW), v_map),
        ],
        out_specs=pl.BlockSpec((1, tq, BW), o_map),
        scratch_shapes=[
            pltpu.VMEM((P, tq, 1), jnp.float32),    # running max m (per head)
            pltpu.VMEM((P, tq, 1), jnp.float32),    # running denominator l
            pltpu.VMEM((P, tq, D), jnp.float32),    # running numerator acc
            pltpu.VMEM((tq, BW), COMPUTE_DTYPE),    # pre-scaled Q tile
        ],
    )

    return pl.pallas_call(
        kernel,
        out_shape=jax.ShapeDtypeStruct((B, T, E), qkv.dtype),
        grid_spec=grid_spec,
        compiler_params=pltpu.CompilerParams(
            dimension_semantics=("parallel", "parallel", "arbitrary"),
            vmem_limit_bytes=VMEM_LIMIT_BYTES,
        ),
    )(qi_tab, ki_tab, last_tab, qkv, qkv, qkv)


# --------------------------- module-level wrapper ----------------------------


class GPT2AttentionPallas:
    """GPT2Attention (self-attention branch, eval) built on Pallas kernels."""

    def __init__(self, hidden_size, num_heads, key):
        assert hidden_size % num_heads == 0
        self.embed_dim = hidden_size
        self.num_heads = num_heads
        self.head_dim = hidden_size // num_heads

        k1, k2, k3, k4 = jax.random.split(key, 4)
        # Conv1D(3E, E): weight (E, 3E), bias (3E,)   -- f32 masters
        self.c_attn_w = 0.02 * jax.random.normal(
            k1, (hidden_size, 3 * hidden_size), jnp.float32)
        self.c_attn_b = 0.02 * jax.random.normal(k2, (3 * hidden_size,), jnp.float32)
        # Conv1D(E, E): weight (E, E), bias (E,)
        self.c_proj_w = 0.02 * jax.random.normal(
            k3, (hidden_size, hidden_size), jnp.float32)
        self.c_proj_b = 0.02 * jax.random.normal(k4, (hidden_size,), jnp.float32)
        # bf16 weight copies for the MXU (native rate + half the weight HBM traffic).
        self.c_attn_w_lp = self.c_attn_w.astype(COMPUTE_DTYPE)
        self.c_proj_w_lp = self.c_proj_w.astype(COMPUTE_DTYPE)

    def __call__(self, hidden_states):
        out_dtype = hidden_states.dtype
        x_lp = hidden_states.astype(COMPUTE_DTYPE)
        # c_attn projection -> packed (B, T, 3E), kept bf16 in HBM.
        qkv = linear_pallas(x_lp, self.c_attn_w_lp, self.c_attn_b,
                            out_dtype=COMPUTE_DTYPE)
        # Flash attention with head split/merge fused into the BlockSpecs.
        attn_out = flash_attention_pallas(qkv, self.num_heads)     # (B, T, E) bf16
        # Output projection back to the input dtype.
        attn_out = linear_pallas(attn_out, self.c_proj_w_lp, self.c_proj_b,
                                 out_dtype=out_dtype)
        # attn_dropout / resid_dropout are identity (p=0.0, eval semantics).
        present = None  # use_cache=False
        # TODO(synk): layer_past / use_cache KV-cache, cross-attention (q_attn),
        # attention_mask / head_mask and output_attentions are not implemented.
        return attn_out, present


# -------------------------------- pure-JAX ref --------------------------------


def reference_forward(mod, hidden_states):
    qkv = hidden_states @ mod.c_attn_w + mod.c_attn_b
    q, k, v = jnp.split(qkv, 3, axis=2)

    def split_heads(x):
        B, T, E = x.shape
        x = x.reshape(B, T, mod.num_heads, mod.head_dim)
        return jnp.transpose(x, (0, 2, 1, 3))

    q, k, v = split_heads(q), split_heads(k), split_heads(v)
    scores = jnp.einsum("bhqd,bhkd->bhqk", q, k) / math.sqrt(mod.head_dim)
    T = q.shape[2]
    causal = jnp.tril(jnp.ones((T, T), dtype=bool))
    scores = jnp.where(causal[None, None], scores, jnp.float32(MASK_VALUE))
    probs = jax.nn.softmax(scores, axis=-1)
    out = jnp.einsum("bhqk,bhkd->bhqd", probs, v)
    B, H, Tq, D = out.shape
    out = jnp.transpose(out, (0, 2, 1, 3)).reshape(B, Tq, H * D)
    return out @ mod.c_proj_w + mod.c_proj_b


# ----------------------------------- main -------------------------------------

if __name__ == "__main__":
    # Small, tile-friendly GPT-2-like shapes: D = 64 heads so the 2-head lane
    # packing is exercised, two q tiles so online softmax + triangular step
    # table are exercised.
    B, T, E, H = 2, 256, 256, 4

    key = jax.random.PRNGKey(0)
    k_param, k_x = jax.random.split(key)
    mod = GPT2AttentionPallas(hidden_size=E, num_heads=H, key=k_param)

    hidden_states = jax.random.normal(k_x, (B, T, E), dtype=jnp.float32)

    out, present = mod(hidden_states)
    out = jax.block_until_ready(out)

    ref = reference_forward(mod, hidden_states)
    assert out.shape == (B, T, E)
    assert present is None
    max_err = float(jnp.max(jnp.abs(out.astype(jnp.float32) - ref)))
    # bf16 MXU operands + bf16 HBM intermediates (accumulation in f32):
    # expected precision vs. the f32 reference is ~1e-3, tolerance is generous.
    assert jnp.allclose(out.astype(jnp.float32), ref, atol=2e-2, rtol=2e-2), (
        f"max abs err {max_err}")

    print("KERNEL_OK")
</pallas_src>

<mosaic_0001>
module attributes {stable_mosaic.version = 11 : i64} {
  func.func @_linear_kernel(%arg0: i32, %arg1: i32, %arg2: i32, %arg3: memref<512x256xbf16, #tpu.memory_space<vmem>>, %arg4: memref<256x256xbf16, #tpu.memory_space<vmem>>, %arg5: memref<1x256xf32, #tpu.memory_space<vmem>>, %arg6: memref<512x256xbf16, #tpu.memory_space<vmem>>, %arg7: memref<512x256xf32, #tpu.memory_space<vmem>>) attributes {dimension_semantics = [#tpu.dimension_semantics<parallel>, #tpu.dimension_semantics<parallel>, #tpu.dimension_semantics<arbitrary>], iteration_bounds = array<i64: 1, 3, 1>, scalar_prefetch = 0 : i64, scratch_operands = 1 : i64, tpu.core_type = #tpu.core_type<tc>, window_params = [{transform_indices = @transform_0, window_bounds = array<i64: 512, 256>}, {transform_indices = @transform_1, window_bounds = array<i64: 256, 256>}, {transform_indices = @transform_2, window_bounds = array<i64: 1, 256>}, {transform_indices = @transform_3, window_bounds = array<i64: 512, 256>}]} {
    %c0_i32 = arith.constant 0 : i32
    %0 = arith.cmpi eq, %arg2, %c0_i32 : i32
    %1 = arith.extui %0 : i1 to i32
    %c0_i32_0 = arith.constant 0 : i32
    %2 = arith.cmpi ne, %1, %c0_i32_0 : i32
    scf.if %2 {
      %cst_10 = arith.constant 0.000000e+00 : f32
      %12 = vector.broadcast %cst_10 : f32 to vector<512x256xf32>
      %c0_11 = arith.constant 0 : index
      %c0_12 = arith.constant 0 : index
      %13 = vector.load %arg5[%c0_11, %c0_12] : memref<1x256xf32, #tpu.memory_space<vmem>>, vector<1x256xf32>
      %14 = vector.broadcast %13 : vector<1x256xf32> to vector<512x256xf32>
      %15 = arith.addf %12, %14 : vector<512x256xf32>
      %c0_13 = arith.constant 0 : index
      %c0_14 = arith.constant 0 : index
      %16 = vector.load %arg7[%c0_13, %c0_14] : memref<512x256xf32, #tpu.memory_space<vmem>>, vector<512x256xf32>
      tpu.vector_store %arg7[%c0_13, %c0_14], %15 {strides = array<i32>} : memref<512x256xf32, #tpu.memory_space<vmem>>, vector<512x256xf32>,
    } else {
    }
    %c0 = arith.constant 0 : index
    %c0_1 = arith.constant 0 : index
    %3 = vector.load %arg7[%c0, %c0_1] : memref<512x256xf32, #tpu.memory_space<vmem>>, vector<512x256xf32>
    %c0_2 = arith.constant 0 : index
    %c0_3 = arith.constant 0 : index
    %4 = vector.load %arg3[%c0_2, %c0_3] : memref<512x256xbf16, #tpu.memory_space<vmem>>, vector<512x256xbf16>
    %c0_4 = arith.constant 0 : index
    %c0_5 = arith.constant 0 : index
    %5 = vector.load %arg4[%c0_4, %c0_5] : memref<256x256xbf16, #tpu.memory_space<vmem>>, vector<256x256xbf16>
    %cst = arith.constant dense<0.000000e+00> : vector<512x256xf32>
    %6 = tpu.matmul %4, %5, %cst {dimension_numbers = #tpu.dot_dimension_numbers<[1], [0], [0], [1], [0, 0, 1, 1], [], []>} : vector<512x256xbf16>, vector<256x256xbf16>, vector<512x256xf32> -> vector<512x256xf32>
    %7 = arith.addf %3, %6 : vector<512x256xf32>
    %c0_6 = arith.constant 0 : index
    %c0_7 = arith.constant 0 : index
    %8 = vector.load %arg7[%c0_6, %c0_7] : memref<512x256xf32, #tpu.memory_space<vmem>>, vector<512x256xf32>
    tpu.vector_store %arg7[%c0_6, %c0_7], %7 {strides = array<i32>} : memref<512x256xf32, #tpu.memory_space<vmem>>, vector<512x256xf32>,
    %c0_i32_8 = arith.constant 0 : i32
    %9 = arith.cmpi eq, %arg2, %c0_i32_8 : i32
    %10 = arith.extui %9 : i1 to i32
    %c0_i32_9 = arith.constant 0 : i32
    %11 = arith.cmpi ne, %10, %c0_i32_9 : i32
    scf.if %11 {
      %c0_10 = arith.constant 0 : index
      %c0_11 = arith.constant 0 : index
      %12 = vector.load %arg7[%c0_10, %c0_11] : memref<512x256xf32, #tpu.memory_space<vmem>>, vector<512x256xf32>
      %13 = arith.truncf %12 : vector<512x256xf32> to vector<512x256xbf16>
      %c0_12 = arith.constant 0 : index
      %c0_13 = arith.constant 0 : index
      %14 = vector.load %arg6[%c0_12, %c0_13] : memref<512x256xbf16, #tpu.memory_space<vmem>>, vector<512x256xbf16>
      tpu.vector_store %arg6[%c0_12, %c0_13], %13 {strides = array<i32>} : memref<512x256xbf16, #tpu.memory_space<vmem>>, vector<512x256xbf16>,
    } else {
    }
    return
  }
  func.func @transform_0(%arg0: i32, %arg1: i32, %arg2: i32) -> (i32, i32) {
    %c0_i32 = arith.constant 0 : i32
    return %arg0, %arg2 : i32, i32
  }
  func.func @transform_1(%arg0: i32, %arg1: i32, %arg2: i32) -> (i32, i32) {
    %c0_i32 = arith.constant 0 : i32
    return %arg2, %arg1 : i32, i32
  }
  func.func @transform_2(%arg0: i32, %arg1: i32, %arg2: i32) -> (i32, i32) {
    %c0_i32 = arith.constant 0 : i32
    %c0_i32_0 = arith.constant 0 : i32
    return %c0_i32, %arg1 : i32, i32
  }
  func.func @transform_3(%arg0: i32, %arg1: i32, %arg2: i32) -> (i32, i32) {
    %c0_i32 = arith.constant 0 : i32
    return %arg0, %arg1 : i32, i32
  }
}

</mosaic_0001>

<bundles_post_ra>
// kernel: tpu_custom_call.1
= control target key start
LH: loop header
LB: loop body
LE: loop exit
PB: predicated region body
PF: predicated region fallthrough
CT: control target
= control target key end

     0   :  { %s3620_s0 = inlined_call_operand.hbm [shape: bf16[512,256], index: 0, kind: input, shape index: {}]   ;;  %s3621_s1 = inlined_call_operand.hbm [shape: bf16[256,768], index: 1, kind: input, shape index: {}]   ;;  %s3622_s2 = inlined_call_operand.hbm [shape: f32[1,768], index: 2, kind: input, shape index: {}]   ;;  %s3623_s3 = inlined_call_operand.hbm [shape: bf16[512,768], index: 3, kind: output, shape index: {}]  }
   0x1   :  { %3629 = sst [smem:[#allocation13_spill]] %s3621_s1 }
   0x2   :  { %8 = vsyncpa [#allocation4], 0 }
   0x3   :  { %9 = vsyncpa [#allocation7], 0 }
   0x4   :  { %11 = vsyncpa [#allocation7 + $0x1], 0 }
   0x5   :  { %12 = vsyncpa [#allocation5], 0 }
   0x6   :  { %14 = vsyncpa [#allocation5 + $0x1], 0  ;;  %s3173_s12 = smov 0   ;;  %s3175_s13 = smov 0  }
   0x7   :  { %s3177_s14 = smov 0   ;;  %s3179_s15 = smov 0  }
   0x8   :  { %s3181_s16 = smov 0   ;;  %s3183_s17 = smov 0  }
   0x9 LB: > { %s35_s18 = sadd.s32 1, %s3137_s16  ;;  %s76_s19 = sadd.s32 1, %s3129_s14  ;;  %s3141_s17 = sphi %s3183_s17, %s20_s17   ;;  %s3137_s16 = sphi %s3181_s16, %s3649_s16   ;;  %s3133_s15 = sphi %s3179_s15, %s3648_s15   ;;  %s3129_s14 = sphi %s3177_s14, %s3647_s14   ;;  %s3125_s13 = sphi %s3175_s13, %s3646_s13   ;;  %s3121_s12 = sphi %s3173_s12, %s3645_s12  }
   0xa   : > { %p37_p0 = scmp.ge.s32.totalorder %s35_s18, 3  ;;  %p83_p1 = scmp.ne.s32.totalorder %s3129_s14, %s3125_s13 }
   0xb   : > { %p84_p2 = scmp.eq.s32.totalorder %s3141_s17, 0  ;;  %p2773_p5 = scmp.lt.s32.totalorder %s3141_s17, 3 }
   0xc   : > { %s3651_s18 = smov (%p37_p0, %s35_s18), 0  ;;  %s186_s22 = sand.u32 1, %s3141_s17  }
   0xd   : > { %p3213_p3 = por %p84_p2, %p83_p1  ;;  %s72_s21 = ssub.s32 %s3137_s16, %s3651_s18 }
   0xe   : > { %p74_p4 = scmp.eq.s32.totalorder %s72_s21, 0  ;;  %s188_s23 = sand.u32 1, %s3129_s14  }
   0xf   : > { %s2472_s25 = sshll.u32 %s188_s23, 8  ;;  %s2648_s26 = sshll.u32 %s3137_s16, 7 }
  0x10   : > { %s3223_s24 = scalar_select %p74_p4, %s3129_s14, %s76_s19  }
  0x11   : > { %s3631_s1 = sld [smem:[#allocation13_spill]]  ;;  %s190_s30 = scalar_lea.vmem [#allocation6], %s2472_s25 }
  0x12   : > { %s200_s4 = sshll.u32 %s190_s30, 4  ;;  %p3233_p6 = pnand %p2773_p5, %p3213_p3  ;;  %s201_s4 = int_to_ptr.vmem [resolvable:$true] %s200_s4 }
  0x13   : > { %s3237_s6 = scalar_lea.sflag [#allocation7], %s186_s22  ;;  %s2988_s7 = scalar_lea.vmem %s201_s4, 4096 }
  0x14   : > { %p2977_p7 = pneg %p3233_p6  ;;  %p2989_p8 = scmp.ne.s32.totalorder %s201_s4, %s2988_s7 }
  0x15   : > { %s3143_s8 = smov [#allocation6]  }
  0x16   : > { %p2991_p9 = pnand %p2989_p8, %p2977_p7  ;;  %s2993_s9 = sshll.u32 %s3143_s8, 4  ;;  %s2994_s9 = int_to_ptr.vmem [resolvable:$false] %s2993_s9 }
  0x17   : > { %s199_s29 = scalar_lea.hbm %s3631_s1, %s2648_s26  ;;  %s2995_s10 = scalar_lea.vmem %s2994_s9, 8192 }
  0x18   : > { %p2992_p10 = pneg %p2991_p9  ;;  %p2996_p11 = scmp.lt.s32.totalorder %s201_s4, %s2994_s9 }
  0x19   : > { %p2997_p12 = scmp.lt.s32.totalorder %s2995_s10, %s2988_s7 }
  0x1b   : > { %p2998_p13 = por %p2997_p12, %p2996_p11 }
  0x1d   : > { %p2999_p0 = pnand %p2998_p13, %p2992_p10 }
  0x1f   : > { %3002 = shalt.err (!%p2999_p0)
}
  0x20   : > { %s3144_s11 = smov 384   ;;  %s3624_s19 = smov 128  }
  0x21   : > { %s3625_s20 = smov 8   ;;  %s3250_s21 = sadd.s32 4294967295, %s3141_s17  }
  0x22   : > { %2764 = dma.hbm_to_vmem [thread:$0]  (!%p3233_p6), %s199_s29, 4096, %s201_s4, %s3237_s6, %s3144_s11, %s3624_s19, %s3625_s20  }
  0x23   : > { %s2468_s22 = sadd.s32 4294967294, %s3141_s17   ;;  %p89_p2 = scmp.ne.s32.totalorder %s3125_s13, %s3121_s12 }
  0x24   : > { %p3627_p3 = scmp.eq.s32.totalorder %s3250_s21, 0  ;;  %p141_p4 = scmp.eq.s32.totalorder %s3250_s21, 2 }
  0x25   : > { %p147_p5 = scmp.eq.s32.totalorder %s2468_s22, 2  ;;  %p2469_p9 = scmp.ge.s32.totalorder %s3141_s17, 1 }
  0x26   : > { %p3259_p8 = por %p3627_p3, %p89_p2  ;;  %p3267_p10 = por %p141_p4, %p83_p1 }
  0x27   : > { %p3271_p11 = por %p147_p5, %p89_p2  ;;  %p154_p12 = scmp.lt.s32.totalorder %s3141_s17, 4 }
  0x28   : > { %s3633_s25 = scalar_select %p3259_p8, 1, 0 }
  0x29   : > { %s3634_s26 = scalar_select %p3267_p10, 1, 0 }
  0x2a   : > { %s3635_s27 = scalar_select %p3271_p11, 1, 0 }
  0x2b   : > { %s2475_s28 = sshll.u32 %s188_s23, 1  ;;  %p3278_p13 = pnand %p2469_p9, %p154_p12 }
  0x2c   : > { %s3147_s30 = smov [#allocation3]   ;;  %s2649_s7 = sshll.u32 %s3137_s16, 5 }
  0x2d   : > { %s172_s4 = sshll.u32 %s3147_s30, 4  ;;  %p2757_p1 = pneg %p3278_p13  ;;  %s3282_s4 = int_to_ptr.vmem [resolvable:$true] %s172_s4 }
  0x2e   : > { %s220_s10 = scalar_lea.hbm %s3622_s2, %s2649_s7  ;;  %s214_s11 = scalar_lea.vmem [#allocation8], %s2475_s28 }
  0x2f   : > { %s222_s22 = sshll.u32 %s214_s11, 4  ;;  %p3292_p0 = pnand %p2757_p1, %p3627_p3  ;;  %s223_s22 = int_to_ptr.vmem [resolvable:$true] %s222_s22 }
  0x30   : > { %s3016_s19 = scalar_lea.vmem %s223_s22, 32  ;;  %s3148_s30 = smov [#allocation8]  }
  0x31   : > { %p3017_p2 = scmp.ne.s32.totalorder %s223_s22, %s3016_s19  ;;  %s3021_s20 = sshll.u32 %s3148_s30, 4  ;;  %s3022_s20 = int_to_ptr.vmem [resolvable:$false] %s3021_s20 }
  0x32   : > { %s3023_s1 = scalar_lea.vmem %s3022_s20, 64  ;;  %p3024_p9 = scmp.lt.s32.totalorder %s223_s22, %s3022_s20 }
  0x33   : > { %p3019_p4 = pnand %p3017_p2, %p2977_p7  ;;  %p3025_p12 = scmp.lt.s32.totalorder %s3023_s1, %s3016_s19 }
  0x35   : > { %p3020_p5 = pneg %p3019_p4  ;;  %p3026_p11 = por %p3025_p12, %p3024_p9 }
  0x37   : > { %p3027_p10 = pnand %p3026_p11, %p3020_p5 }
  0x39   : > { %3030 = shalt.err (!%p3027_p10)
}
  0x3a   : > { %2767 = dma.hbm_to_vmem [thread:$0]  (!%p3233_p6), %s220_s10, 32, %s223_s22, %s3237_s6  }
  0x3b   : > { %p3033_p7 = pneg %p3292_p0  ;;  %s3042_s28 = scalar_lea.vmem %s3282_s4, 8192 }
  0x3c   : > { %p3043_p1 = scmp.ne.s32.totalorder %s3282_s4, %s3042_s28  ;;  %p3050_p3 = scmp.lt.s32.totalorder %s3282_s4, %s3282_s4 }
  0x3d   : > { %p3051_p8 = scmp.lt.s32.totalorder %s3042_s28, %s3042_s28 }
  0x3e   : > { %p3045_p2 = pnand %p3043_p1, %p3033_p7 }
  0x3f   : > { %p3052_p9 = por %p3051_p8, %p3050_p3 }
  0x40   : > { %p3046_p4 = pneg %p3045_p2 }
  0x42   : > { %p3053_p11 = pnand %p3052_p9, %p3046_p4 }
  0x44   : > { %3056 = shalt.err (!%p3053_p11)
}
  0x45   : > { %s3638_s1 = smov 8   ;;  %s3639_s5 = smov 128  }
  0x46   : > { %2760 = dma.hbm_to_vmem [thread:$0]  (!%p3292_p0), %s3620_s0, 8192, %s3282_s4, [#allocation4], %s3639_s5, %s3639_s5, %s3638_s1  }
  0x47   : > { %231 = sbr.rel (%p3278_p13) target bundleno = 485 (0x1e5), region = 32  ;;  %p3640_p6 = scmp.eq.s32.totalorder (!%p3278_p13), %s3250_s21, 0 }
  0x4c   : > { %3108 = dma.done.wait (%p3640_p6), [#allocation4], 8192   ;;  %p3641_p3 = pmov %p3640_p6 }
  0x4d   : > { %s237_s20 = sand.u32 1, %s3250_s21   ;;  %s3325_s7 = sand.u32 1, %s3125_s13  }
  0x4e   : > { %3110 = vsyncadd (%p3641_p3), [#allocation4], 4294959104  ;;  %s2480_s8 = sshll.u32 %s3325_s7, 8  ;;  %s238_s9 = scalar_lea.sflag [#allocation7], %s237_s20 }
  0x4f   : > { %s3328_s10 = scalar_lea.vmem [#allocation6], %s2480_s8  ;;  %p3642_p8 = scmp.ne.s32.totalorder %s3633_s25, 0 }
  0x51   : > { %3112 = dma.done.wait (%p3642_p8), %s238_s9, 4128  }
  0x52   : > { %3114 = vsyncadd (%p3642_p8), %s238_s9, 4294963168  ;;  %v2831_v0 = vld [vmem:[%s3328_s10 + $0x74] ss:$8 sps:$4 sm:$0xff]   ;;  %v2833_v1 = vld [vmem:[%s3328_s10 + $0x70] ss:$8 sps:$4 sm:$0xff]   ;;  %s2481_s21 = sshll.u32 %s3325_s7, 1 }
  0x53   : > { %1135 = vmatprep.subr.bf16.mxu0 %v2831_v0  ;;  %2715 = vmatprep.subr.bf16.mxu1 %v2831_v0  ;;  %v2834_v2 = vld [vmem:[%s3328_s10 + $0x64] ss:$8 sps:$4 sm:$0xff]   ;;  %v2836_v3 = vld [vmem:[%s3328_s10 + $0x60] ss:$8 sps:$4 sm:$0xff]   ;;  %v2837_v4 = vld [vmem:[%s3328_s10 + $0x54] ss:$8 sps:$4 sm:$0xff]  }
  0x54   : > { %1136 = vmatpush1.bf16.msra.mxu0 %v2833_v1  ;;  %2731 = vmatpush1.bf16.msra.mxu1 %v2833_v1  ;;  %v2839_v5 = vld [vmem:[%s3328_s10 + $0x50] ss:$8 sps:$4 sm:$0xff]   ;;  %v2840_v6 = vld [vmem:[%s3328_s10 + $0x44] ss:$8 sps:$4 sm:$0xff]   ;;  %v2842_v7 = vld [vmem:[%s3328_s10 + $0x40] ss:$8 sps:$4 sm:$0xff]  }
  0x55   : > { %1137 = vmatprep.subr.bf16.mxu0 %v2834_v2  ;;  %2716 = vmatprep.subr.bf16.mxu1 %v2834_v2  ;;  %v2843_v8 = vld [vmem:[%s3328_s10 + $0x34] ss:$8 sps:$4 sm:$0xff]   ;;  %v2845_v9 = vld [vmem:[%s3328_s10 + $0x30] ss:$8 sps:$4 sm:$0xff]   ;;  %v2846_v10 = vld [vmem:[%s3328_s10 + $0x24] ss:$8 sps:$4 sm:$0xff]  }
  0x56   : > { %v2848_v11 = vld [vmem:[%s3328_s10 + $0x20] ss:$8 sps:$4 sm:$0xff]   ;;  %v2849_v12 = vld [vmem:[%s3328_s10 + $0x14] ss:$8 sps:$4 sm:$0xff]   ;;  %v2881_v13 = vld [vmem:[#allocation3 + $0x4] ss:$8 sps:$4 sm:$0xff]  }
  0x57   : > { %v2851_v14 = vld [vmem:[%s3328_s10 + $0x10] ss:$8 sps:$4 sm:$0xff]   ;;  %v2884_v15 = vld [vmem:[#allocation3 + $0x104] ss:$8 sps:$4 sm:$0xff]   ;;  %1167 = vmatprep.mubr.bf16.mxu0 %v2881_v13  ;;  %v2854_v17 = vld [vmem:[%s3328_s10] ss:$8 sps:$4 sm:$0xff]  }
  0x58   : > { %1138 = vmatpush1.bf16.msra.mxu0 %v2836_v3  ;;  %2732 = vmatpush1.bf16.msra.mxu1 %v2836_v3  ;;  %v2852_v16 = vld [vmem:[%s3328_s10 + $0x4] ss:$8 sps:$4 sm:$0xff]   ;;  %v2855_v18 = vld [vmem:[%s3328_s10 + $0xf4] ss:$8 sps:$4 sm:$0xff]   ;;  %v2857_v19 = vld [vmem:[%s3328_s10 + $0xf0] ss:$8 sps:$4 sm:$0xff]  }
  0x59   : > { %1139 = vmatprep.subr.bf16.mxu0 %v2837_v4  ;;  %2717 = vmatprep.subr.bf16.mxu1 %v2837_v4  ;;  %v2858_v20 = vld [vmem:[%s3328_s10 + $0xe4] ss:$8 sps:$4 sm:$0xff]   ;;  %v2860_v21 = vld [vmem:[%s3328_s10 + $0xe0] ss:$8 sps:$4 sm:$0xff]   ;;  %v2861_v22 = vld [vmem:[%s3328_s10 + $0xd4] ss:$8 sps:$4 sm:$0xff]  }
  0x5a   : > { %1327 = vmatprep.mubr.bf16.mxu1 %v2884_v15  ;;  %v2863_v23 = vld [vmem:[%s3328_s10 + $0xd0] ss:$8 sps:$4 sm:$0xff]   ;;  %v2864_v24 = vld [vmem:[%s3328_s10 + $0xc4] ss:$8 sps:$4 sm:$0xff]   ;;  %v2866_v25 = vld [vmem:[%s3328_s10 + $0xc0] ss:$8 sps:$4 sm:$0xff]  }
  0x5b   : > { %v2867_v26 = vld [vmem:[%s3328_s10 + $0xb4] ss:$8 sps:$4 sm:$0xff]   ;;  %v2869_v27 = vld [vmem:[%s3328_s10 + $0xb0] ss:$8 sps:$4 sm:$0xff]   ;;  %v2870_v28 = vld [vmem:[%s3328_s10 + $0xa4] ss:$8 sps:$4 sm:$0xff]  }
  0x5c   : > { %1140 = vmatpush1.bf16.msra.mxu0 %v2839_v5  ;;  %2733 = vmatpush1.bf16.msra.mxu1 %v2839_v5  ;;  %v2872_v29 = vld [vmem:[%s3328_s10 + $0xa0] ss:$8 sps:$4 sm:$0xff]   ;;  %v2873_v30 = vld [vmem:[%s3328_s10 + $0x94] ss:$8 sps:$4 sm:$0xff]   ;;  %v2875_v31 = vld [vmem:[%s3328_s10 + $0x90] ss:$8 sps:$4 sm:$0xff]  }
  0x5d   : > { %1141 = vmatprep.subr.bf16.mxu0 %v2840_v6  ;;  %2718 = vmatprep.subr.bf16.mxu1 %v2840_v6  ;;  %v2876_v32 = vld [vmem:[%s3328_s10 + $0x84] ss:$8 sps:$4 sm:$0xff]   ;;  %v2878_v33 = vld [vmem:[%s3328_s10 + $0x80] ss:$8 sps:$4 sm:$0xff]   ;;  %v2885_v36 = vld [vmem:[#allocation3 + $0x14] ss:$8 sps:$4 sm:$0xff]  }
  0x5e   : > { %v2879_v34 = vld [vmem:[#allocation3] ss:$8 sps:$4 sm:$0xff]   ;;  %v2887_v37 = vld [vmem:[#allocation3 + $0x114] ss:$8 sps:$4 sm:$0xff]   ;;  %v2889_v38 = vld [vmem:[#allocation3 + $0x10] ss:$8 sps:$4 sm:$0xff]  }
  0x5f   : > { %v2882_v35 = vld [vmem:[#allocation3 + $0x100] ss:$8 sps:$4 sm:$0xff]   ;;  %v2890_v39 = vld [vmem:[#allocation3 + $0x110] ss:$8 sps:$4 sm:$0xff]   ;;  %v2891_v40 = vld [vmem:[#allocation3 + $0x24] ss:$8 sps:$4 sm:$0xff]  }
  0x60   : > { %1142 = vmatpush1.bf16.msra.mxu0 %v2842_v7  ;;  %2734 = vmatpush1.bf16.msra.mxu1 %v2842_v7  ;;  %v2893_v41 = vld [vmem:[#allocation3 + $0x124] ss:$8 sps:$4 sm:$0xff]   ;;  %v2895_v42 = vld [vmem:[#allocation3 + $0x20] ss:$8 sps:$4 sm:$0xff]   ;;  %v2897_v44 = vld [vmem:[#allocation3 + $0x34] ss:$8 sps:$4 sm:$0xff]  }
  0x61   : > { %1143 = vmatprep.subr.bf16.mxu0 %v2843_v8  ;;  %2719 = vmatprep.subr.bf16.mxu1 %v2843_v8  ;;  %v2896_v43 = vld [vmem:[#allocation3 + $0x120] ss:$8 sps:$4 sm:$0xff]   ;;  %v2899_v45 = vld [vmem:[#allocation3 + $0x134] ss:$8 sps:$4 sm:$0xff]   ;;  %v2901_v46 = vld [vmem:[#allocation3 + $0x30] ss:$8 sps:$4 sm:$0xff]  }
  0x62   : > { %v2902_v47 = vld [vmem:[#allocation3 + $0x130] ss:$8 sps:$4 sm:$0xff]   ;;  %v2903_v48 = vld [vmem:[#allocation3 + $0x44] ss:$8 sps:$4 sm:$0xff]   ;;  %v2907_v50 = vld [vmem:[#allocation3 + $0x40] ss:$8 sps:$4 sm:$0xff]  }
  0x63   : > { %v2905_v49 = vld [vmem:[#allocation3 + $0x144] ss:$8 sps:$4 sm:$0xff]   ;;  %v2908_v51 = vld [vmem:[#allocation3 + $0x140] ss:$8 sps:$4 sm:$0xff]   ;;  %v2909_v52 = vld [vmem:[#allocation3 + $0x54] ss:$8 sps:$4 sm:$0xff]  }
  0x64   : > { %1144 = vmatpush1.bf16.msra.mxu0 %v2845_v9  ;;  %2735 = vmatpush1.bf16.msra.mxu1 %v2845_v9  ;;  %v2911_v53 = vld [vmem:[#allocation3 + $0x154] ss:$8 sps:$4 sm:$0xff]   ;;  %v2913_v54 = vld [vmem:[#allocation3 + $0x50] ss:$8 sps:$4 sm:$0xff]   ;;  %v2915_v56 = vld [vmem:[#allocation3 + $0x64] ss:$8 sps:$4 sm:$0xff]  }
  0x65   : > { %1145 = vmatprep.subr.bf16.mxu0 %v2846_v10  ;;  %2720 = vmatprep.subr.bf16.mxu1 %v2846_v10  ;;  %v2914_v55 = vld [vmem:[#allocation3 + $0x150] ss:$8 sps:$4 sm:$0xff]   ;;  %v2917_v57 = vld [vmem:[#allocation3 + $0x164] ss:$8 sps:$4 sm:$0xff]   ;;  %v2919_v58 = vld [vmem:[#allocation3 + $0x60] ss:$8 sps:$4 sm:$0xff]  }
  0x66   : > { %v2920_v59 = vld [vmem:[#allocation3 + $0x160] ss:$8 sps:$4 sm:$0xff]   ;;  %v2921_v60 = vld [vmem:[#allocation3 + $0x74] ss:$8 sps:$4 sm:$0xff]   ;;  %v2925_v62 = vld [vmem:[#allocation3 + $0x70] ss:$8 sps:$4 sm:$0xff]  }
  0x67   : > { %v2923_v61 = vld [vmem:[#allocation3 + $0x174] ss:$8 sps:$4 sm:$0xff]   ;;  %v2926_v63 = vld [vmem:[#allocation3 + $0x170] ss:$8 sps:$4 sm:$0xff]   ;;  %v2927_v0 = vld [vmem:[#allocation3 + $0x84] ss:$8 sps:$4 sm:$0xff]  }
  0x68   : > { %1146 = vmatpush1.bf16.msra.mxu0 %v2848_v11  ;;  %2736 = vmatpush1.bf16.msra.mxu1 %v2848_v11  ;;  %v2929_v1 = vld [vmem:[#allocation3 + $0x184] ss:$8 sps:$4 sm:$0xff]   ;;  %v2931_v2 = vld [vmem:[#allocation3 + $0x80] ss:$8 sps:$4 sm:$0xff]   ;;  %v2933_v4 = vld [vmem:[#allocation3 + $0x94] ss:$8 sps:$4 sm:$0xff]  }
  0x69   : > { %1147 = vmatprep.subr.bf16.mxu0 %v2849_v12  ;;  %2721 = vmatprep.subr.bf16.mxu1 %v2849_v12  ;;  %v2932_v3 = vld [vmem:[#allocation3 + $0x180] ss:$8 sps:$4 sm:$0xff]   ;;  %v2935_v5 = vld [vmem:[#allocation3 + $0x194] ss:$8 sps:$4 sm:$0xff]   ;;  %v2937_v6 = vld [vmem:[#allocation3 + $0x90] ss:$8 sps:$4 sm:$0xff]  }
  0x6a   : > { %v2938_v7 = vld [vmem:[#allocation3 + $0x190] ss:$8 sps:$4 sm:$0xff]   ;;  %v2939_v8 = vld [vmem:[#allocation3 + $0xa4] ss:$8 sps:$4 sm:$0xff]   ;;  %v2943_v10 = vld [vmem:[#allocation3 + $0xa0] ss:$8 sps:$4 sm:$0xff]  }
  0x6b   : > { %v2941_v9 = vld [vmem:[#allocation3 + $0x1a4] ss:$8 sps:$4 sm:$0xff]   ;;  %v2944_v11 = vld [vmem:[#allocation3 + $0x1a0] ss:$8 sps:$4 sm:$0xff]   ;;  %v2945_v12 = vld [vmem:[#allocation3 + $0xb4] ss:$8 sps:$4 sm:$0xff]  }
  0x6c   : > { %1148 = vmatpush1.bf16.msra.mxu0 %v2851_v14  ;;  %2737 = vmatpush1.bf16.msra.mxu1 %v2851_v14  ;;  %v2947_v13 = vld [vmem:[#allocation3 + $0x1b4] ss:$8 sps:$4 sm:$0xff]   ;;  %v2949_v14 = vld [vmem:[#allocation3 + $0xb0] ss:$8 sps:$4 sm:$0xff]   ;;  %s250_s25 = scalar_lea.vmem [#allocation8], %s2481_s21  ;;  %s2482_s29 = sshll.u32 %s3325_s7, 9 }
  0x6d   : > { %1149 = vmatprep.subr.bf16.mxu0 %v2852_v16  ;;  %2722 = vmatprep.subr.bf16.mxu1 %v2852_v16  ;;  %v2950_v15 = vld [vmem:[#allocation3 + $0x1b0] ss:$8 sps:$4 sm:$0xff]   ;;  %v2951_v16 = vld [vmem:[#allocation3 + $0xc4] ss:$8 sps:$4 sm:$0xff]   ;;  %s3376_s4 = scalar_lea.vmem [#allocation9], %s2482_s29  ;;  %s2714_s11 = sshll.u32 %s3133_s15, 7 }
  0x6e   : > { %s2340_s22 = sshll.u32 %s3376_s4, 4  ;;  %s3569_s30 = scalar_lea.hbm %s3623_s3, %s2714_s11  ;;  %s3571_s22 = int_to_ptr.vmem [resolvable:$true] %s2340_s22 }
  0x6f   : > { %s2324_s28 = scalar_lea.sflag [#allocation5], %s3325_s7  ;;  %s3057_s1 = scalar_lea.vmem %s3571_s22, 8192 }
  0x70   : > { %1150 = vmatpush1.bf16.msra.mxu0 %v2854_v17  ;;  %2738 = vmatpush1.bf16.msra.mxu1 %v2854_v17  ;;  %v2953_v17 = vld [vmem:[#allocation3 + $0x1c4] ss:$8 sps:$4 sm:$0xff]   ;;  %p3058_p10 = scmp.ne.s32.totalorder %s3571_s22, %s3057_s1  ;;  %p3643_p13 = scmp.ne.s32.totalorder %s3634_s26, 0 }
  0x71   : > { %1151 = vmatprep.subr.bf16.mxu0 %v2855_v18  ;;  %2723 = vmatprep.subr.bf16.mxu1 %v2855_v18  ;;  %v2955_v18 = vld [vmem:[#allocation3 + $0xc0] ss:$8 sps:$4 sm:$0xff]   ;;  %s3149_s5 = smov [#allocation9]  }
  0x72   : > { %p3059_p0 = pnand %p3058_p10, %p3643_p13  ;;  %s3061_s19 = sshll.u32 %s3149_s5, 4  ;;  %s3062_s19 = int_to_ptr.vmem [resolvable:$false] %s3061_s19 }
  0x73   : > { %s3063_s6 = scalar_lea.vmem %s3062_s19, 16384  ;;  %p3064_p12 = scmp.lt.s32.totalorder %s3571_s22, %s3062_s19 }
  0x74   : > { %1152 = vmatpush2.bf16.msra.mxu0 %v2857_v19  ;;  %2739 = vmatpush2.bf16.msra.mxu1 %v2857_v19  ;;  %v2956_v19 = vld [vmem:[#allocation3 + $0x1c0] ss:$8 sps:$4 sm:$0xff]   ;;  %p3060_p5 = pneg %p3059_p0  ;;  %p3065_p7 = scmp.lt.s32.totalorder %s3063_s6, %s3057_s1 }
  0x75   : > { %1153 = vmatprep.subr.bf16.mxu0 %v2858_v20  ;;  %2724 = vmatprep.subr.bf16.mxu1 %v2858_v20  ;;  %v2957_v20 = vld [vmem:[#allocation3 + $0xd4] ss:$8 sps:$4 sm:$0xff]  }
  0x76   : > { %p3066_p1 = por %p3065_p7, %p3064_p12 }
  0x78   : > { %1154 = vmatpush2.bf16.msra.mxu0 %v2860_v21  ;;  %2740 = vmatpush2.bf16.msra.mxu1 %v2860_v21  ;;  %v2959_v21 = vld [vmem:[#allocation3 + $0x1d4] ss:$8 sps:$4 sm:$0xff]   ;;  %p3067_p2 = pnand %p3066_p1, %p3060_p5 }
  0x79   : > { %1155 = vmatprep.subr.bf16.mxu0 %v2861_v22  ;;  %2725 = vmatprep.subr.bf16.mxu1 %v2861_v22  ;;  %v2961_v22 = vld [vmem:[#allocation3 + $0xd0] ss:$8 sps:$4 sm:$0xff]  }
  0x7c   : > { %1156 = vmatpush2.bf16.msra.mxu0 %v2863_v23  ;;  %2741 = vmatpush2.bf16.msra.mxu1 %v2863_v23  ;;  %v2962_v23 = vld [vmem:[#allocation3 + $0x1d0] ss:$8 sps:$4 sm:$0xff]  }
  0x7d   : > { %1157 = vmatprep.subr.bf16.mxu0 %v2864_v24  ;;  %2726 = vmatprep.subr.bf16.mxu1 %v2864_v24  ;;  %v2963_v24 = vld [vmem:[#allocation3 + $0xe4] ss:$8 sps:$4 sm:$0xff]  }
  0x80   : > { %1158 = vmatpush2.bf16.msra.mxu0 %v2866_v25  ;;  %2742 = vmatpush2.bf16.msra.mxu1 %v2866_v25  ;;  %v2965_v25 = vld [vmem:[#allocation3 + $0x1e4] ss:$8 sps:$4 sm:$0xff]  }
  0x81   : > { %1159 = vmatprep.subr.bf16.mxu0 %v2867_v26  ;;  %2727 = vmatprep.subr.bf16.mxu1 %v2867_v26  ;;  %v2967_v26 = vld [vmem:[#allocation3 + $0xe0] ss:$8 sps:$4 sm:$0xff]  }
  0x84   : > { %1160 = vmatpush2.bf16.msra.mxu0 %v2869_v27  ;;  %2743 = vmatpush2.bf16.msra.mxu1 %v2869_v27  ;;  %v2968_v27 = vld [vmem:[#allocation3 + $0x1e0] ss:$8 sps:$4 sm:$0xff]  }
  0x85   : > { %1161 = vmatprep.subr.bf16.mxu0 %v2870_v28  ;;  %2728 = vmatprep.subr.bf16.mxu1 %v2870_v28  ;;  %v2969_v28 = vld [vmem:[#allocation3 + $0xf4] ss:$8 sps:$4 sm:$0xff]  }
  0x88   : > { %1162 = vmatpush2.bf16.msra.mxu0 %v2872_v29  ;;  %2744 = vmatpush2.bf16.msra.mxu1 %v2872_v29  ;;  %v2971_v29 = vld [vmem:[#allocation3 + $0x1f4] ss:$8 sps:$4 sm:$0xff]  }
  0x89   : > { %1163 = vmatprep.subr.bf16.mxu0 %v2873_v30  ;;  %2729 = vmatprep.subr.bf16.mxu1 %v2873_v30  ;;  %v2973_v30 = vld [vmem:[#allocation3 + $0xf0] ss:$8 sps:$4 sm:$0xff]  }
  0x8c   : > { %1164 = vmatpush2.bf16.msra.mxu0 %v2875_v31  ;;  %2745 = vmatpush2.bf16.msra.mxu1 %v2875_v31  ;;  %v2974_v31 = vld [vmem:[#allocation3 + $0x1f0] ss:$8 sps:$4 sm:$0xff]  }
  0x8d   : > { %1165 = vmatprep.subr.bf16.mxu0 %v2876_v32  ;;  %2730 = vmatprep.subr.bf16.mxu1 %v2876_v32  ;;  %v291_v32 = vlaneseq }
  0x90   : > { %1166 = vmatpush2.bf16.msra.mxu0 %v2878_v33  ;;  %2746 = vmatpush2.bf16.msra.mxu1 %v2878_v33  ;;  %v292_v33 = vshrl.u32 %v291_v32, 7 }
  0x93   : > { %1168 = vmatmul.mubr.bf16.vlgmr.msra.gmra.mxu0 %v2879_v34  ;;  %1328 = vmatmul.mubr.bf16.vlgmr.msra.gmra.mxu1 %v2882_v35  ;;  %v293_v34 = vsub.s32 0, %v292_v33  ;;  %v297_v35 = vsub.s32 1, %v292_v33 }
  0x94   : > { %1177 = vmatprep.mubr.bf16.mxu0 %v2885_v36  ;;  %1337 = vmatprep.mubr.bf16.mxu1 %v2887_v37  ;;  %v289_v36 = vld [vmem:[%s250_s25] sm:$0x3] }
  0x95   : > { %v3367_v37 = vrot.slane %v289_v36, %v293_v34 }
  0x9b   : > { %1178 = vmatmul.mubr.bf16.gmra.mxu0 %v2889_v38  ;;  %1338 = vmatmul.mubr.bf16.gmra.mxu1 %v2890_v39  ;;  %v3369_v38 = vrot.slane %v289_v36, %v297_v35 }
  0x9c   : > { %1187 = vmatprep.mubr.bf16.mxu0 %v2891_v40  ;;  %1347 = vmatprep.mubr.bf16.mxu1 %v2893_v41 }
  0xa3   : > { %1188 = vmatmul.mubr.bf16.gmra.mxu0 %v2895_v42  ;;  %1348 = vmatmul.mubr.bf16.gmra.mxu1 %v2896_v43 }
  0xa4   : > { %1197 = vmatprep.mubr.bf16.mxu0 %v2897_v44  ;;  %1357 = vmatprep.mubr.bf16.mxu1 %v2899_v45 }
  0xab   : > { %1198 = vmatmul.mubr.bf16.gmra.mxu0 %v2901_v46  ;;  %1358 = vmatmul.mubr.bf16.gmra.mxu1 %v2902_v47 }
  0xac   : > { %1207 = vmatprep.mubr.bf16.mxu0 %v2903_v48  ;;  %1367 = vmatprep.mubr.bf16.mxu1 %v2905_v49 }
  0xb3   : > { %1208 = vmatmul.mubr.bf16.gmra.mxu0 %v2907_v50  ;;  %1368 = vmatmul.mubr.bf16.gmra.mxu1 %v2908_v51 }
  0xb4   : > { %1217 = vmatprep.mubr.bf16.mxu0 %v2909_v52  ;;  %1377 = vmatprep.mubr.bf16.mxu1 %v2911_v53 }
  0xbb   : > { %1218 = vmatmul.mubr.bf16.gmra.mxu0 %v2913_v54  ;;  %1378 = vmatmul.mubr.bf16.gmra.mxu1 %v2914_v55 }
  0xbc   : > { %1227 = vmatprep.mubr.bf16.mxu0 %v2915_v56  ;;  %1387 = vmatprep.mubr.bf16.mxu1 %v2917_v57 }
  0xc3   : > { %1228 = vmatmul.mubr.bf16.gmra.mxu0 %v2919_v58  ;;  %1388 = vmatmul.mubr.bf16.gmra.mxu1 %v2920_v59 }
  0xc4   : > { %1237 = vmatprep.mubr.bf16.mxu0 %v2921_v60  ;;  %1397 = vmatprep.mubr.bf16.mxu1 %v2923_v61 }
  0xcb   : > { %1238 = vmatmul.mubr.bf16.gmra.mxu0 %v2925_v62  ;;  %1398 = vmatmul.mubr.bf16.gmra.mxu1 %v2926_v63 }
  0xcc   : > { %1247 = vmatprep.mubr.bf16.mxu0 %v2927_v0  ;;  %1407 = vmatprep.mubr.bf16.mxu1 %v2929_v1 }
  0xd3   : > { %1248 = vmatmul.mubr.bf16.gmra.mxu0 %v2931_v2  ;;  %1408 = vmatmul.mubr.bf16.gmra.mxu1 %v2932_v3 }
  0xd4   : > { %1257 = vmatprep.mubr.bf16.mxu0 %v2933_v4  ;;  %1417 = vmatprep.mubr.bf16.mxu1 %v2935_v5 }
  0xdb   : > { %1258 = vmatmul.mubr.bf16.gmra.mxu0 %v2937_v6  ;;  %1418 = vmatmul.mubr.bf16.gmra.mxu1 %v2938_v7 }
  0xdc   : > { %1267 = vmatprep.mubr.bf16.mxu0 %v2939_v8  ;;  %1427 = vmatprep.mubr.bf16.mxu1 %v2941_v9 }
  0xe3   : > { %1268 = vmatmul.mubr.bf16.gmra.mxu0 %v2943_v10  ;;  %1428 = vmatmul.mubr.bf16.gmra.mxu1 %v2944_v11 }
  0xe4   : > { %1277 = vmatprep.mubr.bf16.mxu0 %v2945_v12  ;;  %1437 = vmatprep.mubr.bf16.mxu1 %v2947_v13 }
  0xeb   : > { %1278 = vmatmul.mubr.bf16.gmra.mxu0 %v2949_v14  ;;  %1438 = vmatmul.mubr.bf16.gmra.mxu1 %v2950_v15 }
  0xec   : > { %1287 = vmatprep.mubr.bf16.mxu0 %v2951_v16  ;;  %1447 = vmatprep.mubr.bf16.mxu1 %v2953_v17 }
  0xf3   : > { %1288 = vmatmul.mubr.bf16.gmra.mxu0 %v2955_v18  ;;  %1448 = vmatmul.mubr.bf16.gmra.mxu1 %v2956_v19 }
  0xf4   : > { %1297 = vmatprep.mubr.bf16.mxu0 %v2957_v20  ;;  %1457 = vmatprep.mubr.bf16.mxu1 %v2959_v21 }
  0xfb   : > { %1298 = vmatmul.mubr.bf16.gmra.mxu0 %v2961_v22  ;;  %1458 = vmatmul.mubr.bf16.gmra.mxu1 %v2962_v23 }
  0xfc   : > { %1307 = vmatprep.mubr.bf16.mxu0 %v2963_v24  ;;  %1467 = vmatprep.mubr.bf16.mxu1 %v2965_v25 }
 0x103   : > { %1308 = vmatmul.mubr.bf16.gmra.mxu0 %v2967_v26  ;;  %1468 = vmatmul.mubr.bf16.gmra.mxu1 %v2968_v27 }
 0x104   : > { %1317 = vmatprep.mubr.bf16.mxu0 %v2969_v28  ;;  %1477 = vmatprep.mubr.bf16.mxu1 %v2971_v29 }
 0x10b   : > { %1318 = vmatmul.mubr.bf16.gmra.mxu0 %v2973_v30  ;;  %1478 = vmatmul.mubr.bf16.gmra.mxu1 %v2974_v31 }
 0x153   : > { %v1169_v39 = vpop.f32.mrf.mxu0  ;;  %v1329_v40 = vpop.f32.mrf.mxu1 }
 0x154   : > { %v1488_v43 = vadd.f32 %v1169_v39, %v3367_v37  ;;  %v1552_v44 = vadd.f32 %v1329_v40, %v3367_v37 }
 0x155   : > { %v1171_v41 = vpop.f32.mrf.mxu0  ;;  %v1331_v42 = vpop.f32.mrf.mxu1 }
 0x156   : > { %v1489_v45 = vadd.f32 %v1171_v41, %v3369_v38  ;;  %v1553_v46 = vadd.f32 %v1331_v42, %v3369_v38 }
 0x157   : > { %v1173_v47 = vpop.f32.mrf.mxu0  ;;  %v1333_v48 = vpop.f32.mrf.mxu1 }
 0x158   : > { %v2650_v49 = vpack.c.bf16 %v1489_v45, %v1488_v43  ;;  %v2682_v50 = vpack.c.bf16 %v1553_v46, %v1552_v44  ;;  %v1490_v53 = vadd.f32 %v1173_v47, %v3367_v37  ;;  %v1554_v54 = vadd.f32 %v1333_v48, %v3367_v37 }
 0x159   : > { %v1175_v51 = vpop.f32.mrf.mxu0  ;;  %v1335_v52 = vpop.f32.mrf.mxu1 }
 0x15a   : > { %2259 = vst [vmem:[%s3376_s4] sm:$0xff] %v2650_v49  ;;  %2291 = vst [vmem:[%s3376_s4 + $0x100] sm:$0xff] %v2682_v50  ;;  %v1491_v55 = vadd.f32 %v1175_v51, %v3369_v38  ;;  %v1555_v56 = vadd.f32 %v1335_v52, %v3369_v38 }
 0x15b   : > { %v1179_v57 = vpop.f32.mrf.mxu0  ;;  %v1339_v58 = vpop.f32.mrf.mxu1 }
 0x15c   : > { %v2651_v59 = vpack.c.bf16 %v1491_v55, %v1490_v53  ;;  %v2683_v60 = vpack.c.bf16 %v1555_v56, %v1554_v54  ;;  %v1492_v63 = vadd.f32 %v1179_v57, %v3367_v37  ;;  %v1556_v0 = vadd.f32 %v1339_v58, %v3367_v37 }
 0x15d   : > { %v1181_v61 = vpop.f32.mrf.mxu0  ;;  %v1341_v62 = vpop.f32.mrf.mxu1 }
 0x15e   : > { %2260 = vst [vmem:[%s3376_s4 + $0x8] sm:$0xff] %v2651_v59  ;;  %2292 = vst [vmem:[%s3376_s4 + $0x108] sm:$0xff] %v2683_v60  ;;  %v1493_v1 = vadd.f32 %v1181_v61, %v3369_v38  ;;  %v1557_v2 = vadd.f32 %v1341_v62, %v3369_v38 }
 0x15f   : > { %v1183_v3 = vpop.f32.mrf.mxu0  ;;  %v1343_v4 = vpop.f32.mrf.mxu1 }
 0x160   : > { %v2652_v5 = vpack.c.bf16 %v1493_v1, %v1492_v63  ;;  %v2684_v6 = vpack.c.bf16 %v1557_v2, %v1556_v0  ;;  %v1494_v9 = vadd.f32 %v1183_v3, %v3367_v37  ;;  %v1558_v10 = vadd.f32 %v1343_v4, %v3367_v37 }
 0x161   : > { %v1185_v7 = vpop.f32.mrf.mxu0  ;;  %v1345_v8 = vpop.f32.mrf.mxu1 }
 0x162   : > { %2261 = vst [vmem:[%s3376_s4 + $0x10] sm:$0xff] %v2652_v5  ;;  %2293 = vst [vmem:[%s3376_s4 + $0x110] sm:$0xff] %v2684_v6  ;;  %v1495_v11 = vadd.f32 %v1185_v7, %v3369_v38  ;;  %v1559_v12 = vadd.f32 %v1345_v8, %v3369_v38 }
 0x163   : > { %v1189_v13 = vpop.f32.mrf.mxu0  ;;  %v1349_v14 = vpop.f32.mrf.mxu1 }
 0x164   : > { %v2653_v15 = vpack.c.bf16 %v1495_v11, %v1494_v9  ;;  %v2685_v16 = vpack.c.bf16 %v1559_v12, %v1558_v10  ;;  %v1496_v19 = vadd.f32 %v1189_v13, %v3367_v37  ;;  %v1560_v20 = vadd.f32 %v1349_v14, %v3367_v37 }
 0x165   : > { %v1191_v17 = vpop.f32.mrf.mxu0  ;;  %v1351_v18 = vpop.f32.mrf.mxu1 }
 0x166   : > { %2262 = vst [vmem:[%s3376_s4 + $0x18] sm:$0xff] %v2653_v15  ;;  %2294 = vst [vmem:[%s3376_s4 + $0x118] sm:$0xff] %v2685_v16  ;;  %v1497_v21 = vadd.f32 %v1191_v17, %v3369_v38  ;;  %v1561_v22 = vadd.f32 %v1351_v18, %v3369_v38 }
 0x167   : > { %v1193_v23 = vpop.f32.mrf.mxu0  ;;  %v1353_v24 = vpop.f32.mrf.mxu1 }
 0x168   : > { %v2654_v25 = vpack.c.bf16 %v1497_v21, %v1496_v19  ;;  %v2686_v26 = vpack.c.bf16 %v1561_v22, %v1560_v20  ;;  %v1498_v29 = vadd.f32 %v1193_v23, %v3367_v37  ;;  %v1562_v30 = vadd.f32 %v1353_v24, %v3367_v37 }
 0x169   : > { %v1195_v27 = vpop.f32.mrf.mxu0  ;;  %v1355_v28 = vpop.f32.mrf.mxu1 }
 0x16a   : > { %2263 = vst [vmem:[%s3376_s4 + $0x20] sm:$0xff] %v2654_v25  ;;  %2295 = vst [vmem:[%s3376_s4 + $0x120] sm:$0xff] %v2686_v26  ;;  %v1499_v31 = vadd.f32 %v1195_v27, %v3369_v38  ;;  %v1563_v32 = vadd.f32 %v1355_v28, %v3369_v38 }
 0x16b   : > { %v1199_v33 = vpop.f32.mrf.mxu0  ;;  %v1359_v34 = vpop.f32.mrf.mxu1 }
 0x16c   : > { %v2655_v35 = vpack.c.bf16 %v1499_v31, %v1498_v29  ;;  %v2687_v36 = vpack.c.bf16 %v1563_v32, %v1562_v30  ;;  %v1500_v41 = vadd.f32 %v1199_v33, %v3367_v37  ;;  %v1564_v42 = vadd.f32 %v1359_v34, %v3367_v37 }
 0x16d   : > { %v1201_v39 = vpop.f32.mrf.mxu0  ;;  %v1361_v40 = vpop.f32.mrf.mxu1 }
 0x16e   : > { %2264 = vst [vmem:[%s3376_s4 + $0x28] sm:$0xff] %v2655_v35  ;;  %2296 = vst [vmem:[%s3376_s4 + $0x128] sm:$0xff] %v2687_v36  ;;  %v1501_v43 = vadd.f32 %v1201_v39, %v3369_v38  ;;  %v1565_v44 = vadd.f32 %v1361_v40, %v3369_v38 }
 0x16f   : > { %v1203_v45 = vpop.f32.mrf.mxu0  ;;  %v1363_v46 = vpop.f32.mrf.mxu1 }
 0x170   : > { %v2656_v47 = vpack.c.bf16 %v1501_v43, %v1500_v41  ;;  %v2688_v48 = vpack.c.bf16 %v1565_v44, %v1564_v42  ;;  %v1502_v51 = vadd.f32 %v1203_v45, %v3367_v37  ;;  %v1566_v52 = vadd.f32 %v1363_v46, %v3367_v37 }
 0x171   : > { %v1205_v49 = vpop.f32.mrf.mxu0  ;;  %v1365_v50 = vpop.f32.mrf.mxu1 }
 0x172   : > { %2265 = vst [vmem:[%s3376_s4 + $0x30] sm:$0xff] %v2656_v47  ;;  %2297 = vst [vmem:[%s3376_s4 + $0x130] sm:$0xff] %v2688_v48  ;;  %v1503_v53 = vadd.f32 %v1205_v49, %v3369_v38  ;;  %v1567_v54 = vadd.f32 %v1365_v50, %v3369_v38 }
 0x173   : > { %v1209_v55 = vpop.f32.mrf.mxu0  ;;  %v1369_v56 = vpop.f32.mrf.mxu1 }
 0x174   : > { %v2657_v57 = vpack.c.bf16 %v1503_v53, %v1502_v51  ;;  %v2689_v58 = vpack.c.bf16 %v1567_v54, %v1566_v52  ;;  %v1504_v61 = vadd.f32 %v1209_v55, %v3367_v37  ;;  %v1568_v62 = vadd.f32 %v1369_v56, %v3367_v37 }
 0x175   : > { %v1211_v59 = vpop.f32.mrf.mxu0  ;;  %v1371_v60 = vpop.f32.mrf.mxu1 }
 0x176   : > { %2266 = vst [vmem:[%s3376_s4 + $0x38] sm:$0xff] %v2657_v57  ;;  %2298 = vst [vmem:[%s3376_s4 + $0x138] sm:$0xff] %v2689_v58  ;;  %v1505_v63 = vadd.f32 %v1211_v59, %v3369_v38  ;;  %v1569_v0 = vadd.f32 %v1371_v60, %v3369_v38 }
 0x177   : > { %v1213_v1 = vpop.f32.mrf.mxu0  ;;  %v1373_v2 = vpop.f32.mrf.mxu1 }
 0x178   : > { %v2658_v3 = vpack.c.bf16 %v1505_v63, %v1504_v61  ;;  %v2690_v4 = vpack.c.bf16 %v1569_v0, %v1568_v62  ;;  %v1506_v7 = vadd.f32 %v1213_v1, %v3367_v37  ;;  %v1570_v8 = vadd.f32 %v1373_v2, %v3367_v37 }
 0x179   : > { %v1215_v5 = vpop.f32.mrf.mxu0  ;;  %v1375_v6 = vpop.f32.mrf.mxu1 }
 0x17a   : > { %2267 = vst [vmem:[%s3376_s4 + $0x40] sm:$0xff] %v2658_v3  ;;  %2299 = vst [vmem:[%s3376_s4 + $0x140] sm:$0xff] %v2690_v4  ;;  %v1507_v9 = vadd.f32 %v1215_v5, %v3369_v38  ;;  %v1571_v10 = vadd.f32 %v1375_v6, %v3369_v38 }
 0x17b   : > { %v1219_v11 = vpop.f32.mrf.mxu0  ;;  %v1379_v12 = vpop.f32.mrf.mxu1 }
 0x17c   : > { %v2659_v13 = vpack.c.bf16 %v1507_v9, %v1506_v7  ;;  %v2691_v14 = vpack.c.bf16 %v1571_v10, %v1570_v8  ;;  %v1508_v17 = vadd.f32 %v1219_v11, %v3367_v37  ;;  %v1572_v18 = vadd.f32 %v1379_v12, %v3367_v37 }
 0x17d   : > { %v1221_v15 = vpop.f32.mrf.mxu0  ;;  %v1381_v16 = vpop.f32.mrf.mxu1 }
 0x17e   : > { %2268 = vst [vmem:[%s3376_s4 + $0x48] sm:$0xff] %v2659_v13  ;;  %2300 = vst [vmem:[%s3376_s4 + $0x148] sm:$0xff] %v2691_v14  ;;  %v1509_v19 = vadd.f32 %v1221_v15, %v3369_v38  ;;  %v1573_v20 = vadd.f32 %v1381_v16, %v3369_v38 }
 0x17f   : > { %v1223_v21 = vpop.f32.mrf.mxu0  ;;  %v1383_v22 = vpop.f32.mrf.mxu1 }
 0x180   : > { %v2660_v23 = vpack.c.bf16 %v1509_v19, %v1508_v17  ;;  %v2692_v24 = vpack.c.bf16 %v1573_v20, %v1572_v18  ;;  %v1510_v27 = vadd.f32 %v1223_v21, %v3367_v37  ;;  %v1574_v28 = vadd.f32 %v1383_v22, %v3367_v37 }
 0x181   : > { %v1225_v25 = vpop.f32.mrf.mxu0  ;;  %v1385_v26 = vpop.f32.mrf.mxu1 }
 0x182   : > { %2269 = vst [vmem:[%s3376_s4 + $0x50] sm:$0xff] %v2660_v23  ;;  %2301 = vst [vmem:[%s3376_s4 + $0x150] sm:$0xff] %v2692_v24  ;;  %v1511_v29 = vadd.f32 %v1225_v25, %v3369_v38  ;;  %v1575_v30 = vadd.f32 %v1385_v26, %v3369_v38 }
 0x183   : > { %v1229_v31 = vpop.f32.mrf.mxu0  ;;  %v1389_v32 = vpop.f32.mrf.mxu1 }
 0x184   : > { %v2661_v33 = vpack.c.bf16 %v1511_v29, %v1510_v27  ;;  %v2693_v34 = vpack.c.bf16 %v1575_v30, %v1574_v28  ;;  %v1512_v39 = vadd.f32 %v1229_v31, %v3367_v37  ;;  %v1576_v40 = vadd.f32 %v1389_v32, %v3367_v37 }
 0x185   : > { %v1231_v35 = vpop.f32.mrf.mxu0  ;;  %v1391_v36 = vpop.f32.mrf.mxu1 }
 0x186   : > { %2270 = vst [vmem:[%s3376_s4 + $0x58] sm:$0xff] %v2661_v33  ;;  %2302 = vst [vmem:[%s3376_s4 + $0x158] sm:$0xff] %v2693_v34  ;;  %v1513_v41 = vadd.f32 %v1231_v35, %v3369_v38  ;;  %v1577_v42 = vadd.f32 %v1391_v36, %v3369_v38 }
 0x187   : > { %v1233_v43 = vpop.f32.mrf.mxu0  ;;  %v1393_v44 = vpop.f32.mrf.mxu1 }
 0x188   : > { %v2662_v45 = vpack.c.bf16 %v1513_v41, %v1512_v39  ;;  %v2694_v46 = vpack.c.bf16 %v1577_v42, %v1576_v40  ;;  %v1514_v49 = vadd.f32 %v1233_v43, %v3367_v37  ;;  %v1578_v50 = vadd.f32 %v1393_v44, %v3367_v37 }
 0x189   : > { %v1235_v47 = vpop.f32.mrf.mxu0  ;;  %v1395_v48 = vpop.f32.mrf.mxu1 }
 0x18a   : > { %2271 = vst [vmem:[%s3376_s4 + $0x60] sm:$0xff] %v2662_v45  ;;  %2303 = vst [vmem:[%s3376_s4 + $0x160] sm:$0xff] %v2694_v46  ;;  %v1515_v51 = vadd.f32 %v1235_v47, %v3369_v38  ;;  %v1579_v52 = vadd.f32 %v1395_v48, %v3369_v38 }
 0x18b   : > { %v1239_v53 = vpop.f32.mrf.mxu0  ;;  %v1399_v54 = vpop.f32.mrf.mxu1 }
 0x18c   : > { %v2663_v55 = vpack.c.bf16 %v1515_v51, %v1514_v49  ;;  %v2695_v56 = vpack.c.bf16 %v1579_v52, %v1578_v50  ;;  %v1516_v59 = vadd.f32 %v1239_v53, %v3367_v37  ;;  %v1580_v60 = vadd.f32 %v1399_v54, %v3367_v37 }
 0x18d   : > { %v1241_v57 = vpop.f32.mrf.mxu0  ;;  %v1401_v58 = vpop.f32.mrf.mxu1 }
 0x18e   : > { %2272 = vst [vmem:[%s3376_s4 + $0x68] sm:$0xff] %v2663_v55  ;;  %2304 = vst [vmem:[%s3376_s4 + $0x168] sm:$0xff] %v2695_v56  ;;  %v1517_v61 = vadd.f32 %v1241_v57, %v3369_v38  ;;  %v1581_v62 = vadd.f32 %v1401_v58, %v3369_v38 }
 0x18f   : > { %v1243_v63 = vpop.f32.mrf.mxu0  ;;  %v1403_v0 = vpop.f32.mrf.mxu1 }
 0x190   : > { %v2664_v1 = vpack.c.bf16 %v1517_v61, %v1516_v59  ;;  %v2696_v2 = vpack.c.bf16 %v1581_v62, %v1580_v60  ;;  %v1518_v5 = vadd.f32 %v1243_v63, %v3367_v37  ;;  %v1582_v6 = vadd.f32 %v1403_v0, %v3367_v37 }
 0x191   : > { %v1245_v3 = vpop.f32.mrf.mxu0  ;;  %v1405_v4 = vpop.f32.mrf.mxu1 }
 0x192   : > { %2273 = vst [vmem:[%s3376_s4 + $0x70] sm:$0xff] %v2664_v1  ;;  %2305 = vst [vmem:[%s3376_s4 + $0x170] sm:$0xff] %v2696_v2  ;;  %v1519_v7 = vadd.f32 %v1245_v3, %v3369_v38  ;;  %v1583_v8 = vadd.f32 %v1405_v4, %v3369_v38 }
 0x193   : > { %v1249_v9 = vpop.f32.mrf.mxu0  ;;  %v1409_v10 = vpop.f32.mrf.mxu1 }
 0x194   : > { %v2665_v11 = vpack.c.bf16 %v1519_v7, %v1518_v5  ;;  %v2697_v12 = vpack.c.bf16 %v1583_v8, %v1582_v6  ;;  %v1520_v15 = vadd.f32 %v1249_v9, %v3367_v37  ;;  %v1584_v16 = vadd.f32 %v1409_v10, %v3367_v37 }
 0x195   : > { %v1251_v13 = vpop.f32.mrf.mxu0  ;;  %v1411_v14 = vpop.f32.mrf.mxu1 }
 0x196   : > { %2274 = vst [vmem:[%s3376_s4 + $0x78] sm:$0xff] %v2665_v11  ;;  %2306 = vst [vmem:[%s3376_s4 + $0x178] sm:$0xff] %v2697_v12  ;;  %v1521_v17 = vadd.f32 %v1251_v13, %v3369_v38  ;;  %v1585_v18 = vadd.f32 %v1411_v14, %v3369_v38 }
 0x197   : > { %v1253_v19 = vpop.f32.mrf.mxu0  ;;  %v1413_v20 = vpop.f32.mrf.mxu1 }
 0x198   : > { %v2666_v21 = vpack.c.bf16 %v1521_v17, %v1520_v15  ;;  %v2698_v22 = vpack.c.bf16 %v1585_v18, %v1584_v16  ;;  %v1522_v25 = vadd.f32 %v1253_v19, %v3367_v37  ;;  %v1586_v26 = vadd.f32 %v1413_v20, %v3367_v37 }
 0x199   : > { %v1255_v23 = vpop.f32.mrf.mxu0  ;;  %v1415_v24 = vpop.f32.mrf.mxu1 }
 0x19a   : > { %2275 = vst [vmem:[%s3376_s4 + $0x80] sm:$0xff] %v2666_v21  ;;  %2307 = vst [vmem:[%s3376_s4 + $0x180] sm:$0xff] %v2698_v22  ;;  %v1523_v27 = vadd.f32 %v1255_v23, %v3369_v38  ;;  %v1587_v28 = vadd.f32 %v1415_v24, %v3369_v38 }
 0x19b   : > { %v1259_v29 = vpop.f32.mrf.mxu0  ;;  %v1419_v30 = vpop.f32.mrf.mxu1 }
 0x19c   : > { %v2667_v31 = vpack.c.bf16 %v1523_v27, %v1522_v25  ;;  %v2699_v32 = vpack.c.bf16 %v1587_v28, %v1586_v26  ;;  %v1524_v35 = vadd.f32 %v1259_v29, %v3367_v37  ;;  %v1588_v36 = vadd.f32 %v1419_v30, %v3367_v37 }
 0x19d   : > { %v1261_v33 = vpop.f32.mrf.mxu0  ;;  %v1421_v34 = vpop.f32.mrf.mxu1 }
 0x19e   : > { %2276 = vst [vmem:[%s3376_s4 + $0x88] sm:$0xff] %v2667_v31  ;;  %2308 = vst [vmem:[%s3376_s4 + $0x188] sm:$0xff] %v2699_v32  ;;  %v1525_v39 = vadd.f32 %v1261_v33, %v3369_v38  ;;  %v1589_v40 = vadd.f32 %v1421_v34, %v3369_v38 }
 0x19f   : > { %v1263_v41 = vpop.f32.mrf.mxu0  ;;  %v1423_v42 = vpop.f32.mrf.mxu1 }
 0x1a0   : > { %v2668_v43 = vpack.c.bf16 %v1525_v39, %v1524_v35  ;;  %v2700_v44 = vpack.c.bf16 %v1589_v40, %v1588_v36  ;;  %v1526_v47 = vadd.f32 %v1263_v41, %v3367_v37  ;;  %v1590_v48 = vadd.f32 %v1423_v42, %v3367_v37 }
 0x1a1   : > { %v1265_v45 = vpop.f32.mrf.mxu0  ;;  %v1425_v46 = vpop.f32.mrf.mxu1 }
 0x1a2   : > { %2277 = vst [vmem:[%s3376_s4 + $0x90] sm:$0xff] %v2668_v43  ;;  %2309 = vst [vmem:[%s3376_s4 + $0x190] sm:$0xff] %v2700_v44  ;;  %v1527_v49 = vadd.f32 %v1265_v45, %v3369_v38  ;;  %v1591_v50 = vadd.f32 %v1425_v46, %v3369_v38 }
 0x1a3   : > { %v1269_v51 = vpop.f32.mrf.mxu0  ;;  %v1429_v52 = vpop.f32.mrf.mxu1 }
 0x1a4   : > { %v2669_v53 = vpack.c.bf16 %v1527_v49, %v1526_v47  ;;  %v2701_v54 = vpack.c.bf16 %v1591_v50, %v1590_v48  ;;  %v1528_v57 = vadd.f32 %v1269_v51, %v3367_v37  ;;  %v1592_v58 = vadd.f32 %v1429_v52, %v3367_v37 }
 0x1a5   : > { %v1271_v55 = vpop.f32.mrf.mxu0  ;;  %v1431_v56 = vpop.f32.mrf.mxu1 }
 0x1a6   : > { %2278 = vst [vmem:[%s3376_s4 + $0x98] sm:$0xff] %v2669_v53  ;;  %2310 = vst [vmem:[%s3376_s4 + $0x198] sm:$0xff] %v2701_v54  ;;  %v1529_v59 = vadd.f32 %v1271_v55, %v3369_v38  ;;  %v1593_v60 = vadd.f32 %v1431_v56, %v3369_v38 }
 0x1a7   : > { %v1273_v61 = vpop.f32.mrf.mxu0  ;;  %v1433_v62 = vpop.f32.mrf.mxu1 }
 0x1a8   : > { %v2670_v63 = vpack.c.bf16 %v1529_v59, %v1528_v57  ;;  %v2702_v0 = vpack.c.bf16 %v1593_v60, %v1592_v58  ;;  %v1530_v3 = vadd.f32 %v1273_v61, %v3367_v37  ;;  %v1594_v4 = vadd.f32 %v1433_v62, %v3367_v37 }
 0x1a9   : > { %v1275_v1 = vpop.f32.mrf.mxu0  ;;  %v1435_v2 = vpop.f32.mrf.mxu1 }
 0x1aa   : > { %2279 = vst [vmem:[%s3376_s4 + $0xa0] sm:$0xff] %v2670_v63  ;;  %2311 = vst [vmem:[%s3376_s4 + $0x1a0] sm:$0xff] %v2702_v0  ;;  %v1531_v5 = vadd.f32 %v1275_v1, %v3369_v38  ;;  %v1595_v6 = vadd.f32 %v1435_v2, %v3369_v38 }
 0x1ab   : > { %v1279_v7 = vpop.f32.mrf.mxu0  ;;  %v1439_v8 = vpop.f32.mrf.mxu1 }
 0x1ac   : > { %v2671_v9 = vpack.c.bf16 %v1531_v5, %v1530_v3  ;;  %v2703_v10 = vpack.c.bf16 %v1595_v6, %v1594_v4  ;;  %v1532_v13 = vadd.f32 %v1279_v7, %v3367_v37  ;;  %v1596_v14 = vadd.f32 %v1439_v8, %v3367_v37 }
 0x1ad   : > { %v1281_v11 = vpop.f32.mrf.mxu0  ;;  %v1441_v12 = vpop.f32.mrf.mxu1 }
 0x1ae   : > { %2280 = vst [vmem:[%s3376_s4 + $0xa8] sm:$0xff] %v2671_v9  ;;  %2312 = vst [vmem:[%s3376_s4 + $0x1a8] sm:$0xff] %v2703_v10  ;;  %v1533_v15 = vadd.f32 %v1281_v11, %v3369_v38  ;;  %v1597_v16 = vadd.f32 %v1441_v12, %v3369_v38 }
 0x1af   : > { %v1283_v17 = vpop.f32.mrf.mxu0  ;;  %v1443_v18 = vpop.f32.mrf.mxu1 }
 0x1b0   : > { %v2672_v19 = vpack.c.bf16 %v1533_v15, %v1532_v13  ;;  %v2704_v20 = vpack.c.bf16 %v1597_v16, %v1596_v14  ;;  %v1534_v23 = vadd.f32 %v1283_v17, %v3367_v37  ;;  %v1598_v24 = vadd.f32 %v1443_v18, %v3367_v37 }
 0x1b1   : > { %v1285_v21 = vpop.f32.mrf.mxu0  ;;  %v1445_v22 = vpop.f32.mrf.mxu1 }
 0x1b2   : > { %2281 = vst [vmem:[%s3376_s4 + $0xb0] sm:$0xff] %v2672_v19  ;;  %2313 = vst [vmem:[%s3376_s4 + $0x1b0] sm:$0xff] %v2704_v20  ;;  %v1535_v25 = vadd.f32 %v1285_v21, %v3369_v38  ;;  %v1599_v26 = vadd.f32 %v1445_v22, %v3369_v38 }
 0x1b3   : > { %v1289_v27 = vpop.f32.mrf.mxu0  ;;  %v1449_v28 = vpop.f32.mrf.mxu1 }
 0x1b4   : > { %v2673_v29 = vpack.c.bf16 %v1535_v25, %v1534_v23  ;;  %v2705_v30 = vpack.c.bf16 %v1599_v26, %v1598_v24  ;;  %v1536_v33 = vadd.f32 %v1289_v27, %v3367_v37  ;;  %v1600_v34 = vadd.f32 %v1449_v28, %v3367_v37 }
 0x1b5   : > { %v1291_v31 = vpop.f32.mrf.mxu0  ;;  %v1451_v32 = vpop.f32.mrf.mxu1 }
 0x1b6   : > { %2282 = vst [vmem:[%s3376_s4 + $0xb8] sm:$0xff] %v2673_v29  ;;  %2314 = vst [vmem:[%s3376_s4 + $0x1b8] sm:$0xff] %v2705_v30  ;;  %v1537_v35 = vadd.f32 %v1291_v31, %v3369_v38  ;;  %v1601_v36 = vadd.f32 %v1451_v32, %v3369_v38 }
 0x1b7   : > { %v1293_v39 = vpop.f32.mrf.mxu0  ;;  %v1453_v40 = vpop.f32.mrf.mxu1 }
 0x1b8   : > { %v2674_v41 = vpack.c.bf16 %v1537_v35, %v1536_v33  ;;  %v2706_v42 = vpack.c.bf16 %v1601_v36, %v1600_v34  ;;  %v1538_v45 = vadd.f32 %v1293_v39, %v3367_v37  ;;  %v1602_v46 = vadd.f32 %v1453_v40, %v3367_v37 }
 0x1b9   : > { %v1295_v43 = vpop.f32.mrf.mxu0  ;;  %v1455_v44 = vpop.f32.mrf.mxu1 }
 0x1ba   : > { %2283 = vst [vmem:[%s3376_s4 + $0xc0] sm:$0xff] %v2674_v41  ;;  %2315 = vst [vmem:[%s3376_s4 + $0x1c0] sm:$0xff] %v2706_v42  ;;  %v1539_v47 = vadd.f32 %v1295_v43, %v3369_v38  ;;  %v1603_v48 = vadd.f32 %v1455_v44, %v3369_v38 }
 0x1bb   : > { %v1299_v49 = vpop.f32.mrf.mxu0  ;;  %v1459_v50 = vpop.f32.mrf.mxu1 }
 0x1bc   : > { %v2675_v51 = vpack.c.bf16 %v1539_v47, %v1538_v45  ;;  %v2707_v52 = vpack.c.bf16 %v1603_v48, %v1602_v46  ;;  %v1540_v55 = vadd.f32 %v1299_v49, %v3367_v37  ;;  %v1604_v56 = vadd.f32 %v1459_v50, %v3367_v37 }
 0x1bd   : > { %v1301_v53 = vpop.f32.mrf.mxu0  ;;  %v1461_v54 = vpop.f32.mrf.mxu1 }
 0x1be   : > { %2284 = vst [vmem:[%s3376_s4 + $0xc8] sm:$0xff] %v2675_v51  ;;  %2316 = vst [vmem:[%s3376_s4 + $0x1c8] sm:$0xff] %v2707_v52  ;;  %v1541_v57 = vadd.f32 %v1301_v53, %v3369_v38  ;;  %v1605_v58 = vadd.f32 %v1461_v54, %v3369_v38 }
 0x1bf   : > { %v1303_v59 = vpop.f32.mrf.mxu0  ;;  %v1463_v60 = vpop.f32.mrf.mxu1 }
 0x1c0   : > { %v2676_v61 = vpack.c.bf16 %v1541_v57, %v1540_v55  ;;  %v2708_v62 = vpack.c.bf16 %v1605_v58, %v1604_v56  ;;  %v1542_v1 = vadd.f32 %v1303_v59, %v3367_v37  ;;  %v1606_v2 = vadd.f32 %v1463_v60, %v3367_v37 }
 0x1c1   : > { %v1305_v63 = vpop.f32.mrf.mxu0  ;;  %v1465_v0 = vpop.f32.mrf.mxu1 }
 0x1c2   : > { %2285 = vst [vmem:[%s3376_s4 + $0xd0] sm:$0xff] %v2676_v61  ;;  %2317 = vst [vmem:[%s3376_s4 + $0x1d0] sm:$0xff] %v2708_v62  ;;  %v1543_v3 = vadd.f32 %v1305_v63, %v3369_v38  ;;  %v1607_v4 = vadd.f32 %v1465_v0, %v3369_v38 }
 0x1c3   : > { %v1309_v5 = vpop.f32.mrf.mxu0  ;;  %v1469_v6 = vpop.f32.mrf.mxu1 }
 0x1c4   : > { %v2677_v7 = vpack.c.bf16 %v1543_v3, %v1542_v1  ;;  %v2709_v8 = vpack.c.bf16 %v1607_v4, %v1606_v2  ;;  %v1544_v11 = vadd.f32 %v1309_v5, %v3367_v37  ;;  %v1608_v12 = vadd.f32 %v1469_v6, %v3367_v37 }
 0x1c5   : > { %v1311_v9 = vpop.f32.mrf.mxu0  ;;  %v1471_v10 = vpop.f32.mrf.mxu1 }
 0x1c6   : > { %2286 = vst [vmem:[%s3376_s4 + $0xd8] sm:$0xff] %v2677_v7  ;;  %2318 = vst [vmem:[%s3376_s4 + $0x1d8] sm:$0xff] %v2709_v8  ;;  %v1545_v13 = vadd.f32 %v1311_v9, %v3369_v38  ;;  %v1609_v14 = vadd.f32 %v1471_v10, %v3369_v38 }
 0x1c7   : > { %v1313_v15 = vpop.f32.mrf.mxu0  ;;  %v1473_v16 = vpop.f32.mrf.mxu1 }
 0x1c8   : > { %v2678_v17 = vpack.c.bf16 %v1545_v13, %v1544_v11  ;;  %v2710_v18 = vpack.c.bf16 %v1609_v14, %v1608_v12  ;;  %v1546_v21 = vadd.f32 %v1313_v15, %v3367_v37  ;;  %v1610_v22 = vadd.f32 %v1473_v16, %v3367_v37 }
 0x1c9   : > { %v1315_v19 = vpop.f32.mrf.mxu0  ;;  %v1475_v20 = vpop.f32.mrf.mxu1 }
 0x1ca   : > { %2287 = vst [vmem:[%s3376_s4 + $0xe0] sm:$0xff] %v2678_v17  ;;  %2319 = vst [vmem:[%s3376_s4 + $0x1e0] sm:$0xff] %v2710_v18  ;;  %v1547_v23 = vadd.f32 %v1315_v19, %v3369_v38  ;;  %v1611_v24 = vadd.f32 %v1475_v20, %v3369_v38 }
 0x1cb   : > { %v1319_v25 = vpop.f32.mrf.mxu0  ;;  %v1479_v26 = vpop.f32.mrf.mxu1 }
 0x1cc   : > { %v2679_v27 = vpack.c.bf16 %v1547_v23, %v1546_v21  ;;  %v2711_v28 = vpack.c.bf16 %v1611_v24, %v1610_v22  ;;  %v1548_v31 = vadd.f32 %v1319_v25, %v3367_v37  ;;  %v1612_v32 = vadd.f32 %v1479_v26, %v3367_v37 }
 0x1cd   : > { %v1321_v29 = vpop.f32.mrf.mxu0  ;;  %v1481_v30 = vpop.f32.mrf.mxu1 }
 0x1ce   : > { %2288 = vst [vmem:[%s3376_s4 + $0xe8] sm:$0xff] %v2679_v27  ;;  %2320 = vst [vmem:[%s3376_s4 + $0x1e8] sm:$0xff] %v2711_v28  ;;  %v1549_v33 = vadd.f32 %v1321_v29, %v3369_v38  ;;  %v1613_v34 = vadd.f32 %v1481_v30, %v3369_v38 }
 0x1cf   : > { %v1323_v35 = vpop.f32.mrf.mxu0  ;;  %v1483_v36 = vpop.f32.mrf.mxu1 }
 0x1d0   : > { %v2680_v39 = vpack.c.bf16 %v1549_v33, %v1548_v31  ;;  %v2712_v40 = vpack.c.bf16 %v1613_v34, %v1612_v32  ;;  %v1550_v43 = vadd.f32 %v1323_v35, %v3367_v37  ;;  %v1614_v44 = vadd.f32 %v1483_v36, %v3367_v37 }
 0x1d1   : > { %v1325_v41 = vpop.f32.mrf.mxu0  ;;  %v1485_v42 = vpop.f32.mrf.mxu1 }
 0x1d2   : > { %2289 = vst [vmem:[%s3376_s4 + $0xf0] sm:$0xff] %v2680_v39  ;;  %2321 = vst [vmem:[%s3376_s4 + $0x1f0] sm:$0xff] %v2712_v40  ;;  %v1551_v45 = vadd.f32 %v1325_v41, %v3369_v38  ;;  %v1615_v46 = vadd.f32 %v1485_v42, %v3369_v38 }
 0x1d4   : > { %v2681_v47 = vpack.c.bf16 %v1551_v45, %v1550_v43  ;;  %v2713_v48 = vpack.c.bf16 %v1615_v46, %v1614_v44 }
 0x1d6   : > { %2290 = vst [vmem:[%s3376_s4 + $0xf8] sm:$0xff] %v2681_v47  ;;  %2322 = vst [vmem:[%s3376_s4 + $0x1f8] sm:$0xff] %v2713_v48 }
 0x1d7   : > { %3070 = shalt.err (!%p3067_p2)
}
 0x1d8   : > { %s3071_s20 = scalar_lea.hbm %s3569_s30, 8192  ;;  %s3075_s10 = scalar_lea.hbm %s3623_s3, 24576 }
 0x1d9   : > { %p3072_p4 = scmp.ne.s32.totalorder %s3569_s30, %s3071_s20  ;;  %p3076_p6 = scmp.lt.s32.totalorder %s3569_s30, %s3623_s3 }
 0x1da   : > { %p3077_p3 = scmp.lt.s32.totalorder %s3075_s10, %s3071_s20 }
 0x1db   : > { %p3073_p9 = pnand %p3072_p4, %p3643_p13 }
 0x1dc   : > { %p3078_p8 = por %p3077_p3, %p3076_p6 }
 0x1dd   : > { %p3074_p11 = pneg %p3073_p9 }
 0x1df   : > { %p3079_p10 = pnand %p3078_p8, %p3074_p11 }
 0x1e1   : > { %3082 = shalt.err (!%p3079_p10)
}
 0x1e2   : > { %s3150_s29 = smov 128   ;;  %s3151_s4 = smov 384  }
 0x1e3   : > { %s3152_s11 = smov 8  }
 0x1e4   : > { %2755 = dma.vmem_to_hbm [thread:$0]  (%p3643_p13), %s3571_s22, 8192, %s3569_s30, %s2324_s28, %s3150_s29, %s3151_s4, %s3152_s11  }
 0x1e5 PF: > { %p2775_p0 = scmp.ge.s32.totalorder %s3141_s17, 2  ;;  %s2355_s15 = sand.u32 1, %s3121_s12  }
 0x1e6   : > { %p3644_p5 = scmp.ne.s32.totalorder %s3635_s27, 0  ;;  %s2356_s23 = scalar_lea.sflag [#allocation5], %s2355_s15 }
 0x1e8   : > { %p2769_p12 = pnand %p2775_p0, %p3644_p5 }
 0x1ea   : > { %p2770_p7 = pneg %p2769_p12 }
 0x1ec   : > { %3116 = dma.done.wait (%p2770_p7), %s2356_s23, 8192  }
 0x1ed   : > { %3118 = vsyncadd (%p2770_p7), %s2356_s23, 4294959104  ;;  %s20_s17 = sadd.s32 1, %s3141_s17   ;;  %s3645_s12 = smov %s3125_s13 }
 0x1ee   : > { %p17_p1 = scmp.ge.s32.totalorder %s20_s17, 5   ;;  %s3646_s13 = smov %s3129_s14 }
 0x1ef   : > { %s3647_s14 = smov %s3223_s24  ;;  %s3648_s15 = smov %s3137_s16 }
 0x1f0   : > { %s3649_s16 = smov %s3651_s18  ;;  %19 = sbr.rel (!%p17_p1) target bundleno = 9 (0x9), region = 102 }
 0x1f5   :  { %2361 = vsyncpa [#allocation4], 1 }
 0x1f6   :  { %2363 = vsyncpa [#allocation4 + $0x1], 1 }
 0x1f7   :  { %2364 = vsyncpa [#allocation7], 1 }
 0x1f8   :  { %2366 = vsyncpa [#allocation7 + $0x1], 1 }
 0x1f9   :  { %2367 = vsyncpa [#allocation5], 1 }
 0x1fa   :  { %2369 = vsyncpa [#allocation5 + $0x1], 1 }

</bundles_post_ra>
